<compile_context>
chip_gen: v6e
topology: v6e:2x2x1
jax: 0.10.0
libtpu: 0.0.40
codegen_flags: <defaults>
</compile_context>

<pallas_src>
import jax
import jax.numpy as jnp
from jax.experimental import pallas as pl
from jax.experimental.pallas import tpu as pltpu


def _mlp_kernel(xt_ref, w1_ref, b1_ref, w2_ref, b2_ref, w3_ref, b3_ref, o_ref):
    # xt_ref: (in_size, tile_b)  -- batch on the lane axis (lane-dense).
    xt = xt_ref[...]

    # hidden_layer + tanh        : (hid, tile_b)
    h1 = jnp.tanh(
        jnp.dot(w1_ref[...], xt, preferred_element_type=jnp.float32) + b1_ref[...]
    )
    # hidden_layer2 + tanh       : (hid, tile_b)
    h2 = jnp.tanh(
        jnp.dot(w2_ref[...], h1, preferred_element_type=jnp.float32) + b2_ref[...]
    )
    # output_layer               : (out, tile_b)
    logits = (
        jnp.dot(w3_ref[...], h2, preferred_element_type=jnp.float32) + b3_ref[...]
    )

    # Softmax over the feature axis (= original dim=1), which is now axis 0:
    # cross-sublane max/sum go to the XLU slot; exp goes to the EUP slot.
    m = jnp.max(logits, axis=0, keepdims=True)
    e = jnp.exp(logits - m)
    denom = jnp.sum(e, axis=0, keepdims=True)
    # Exact reciprocal keeps the 1e-5 tolerance; approx=True + one Newton step
    # is an option if the epilogue ever shows up in the profile.
    o_ref[...] = (e * pl.reciprocal(denom, approx=False)).astype(o_ref.dtype)


def prepare_params(params):
    """One-time, outside the hot path.

    With the transposed (lane-dense) kernel layout, the PyTorch nn.Linear
    weight convention (out, in) is already what we want — no transpose.
    Biases become (features, 1) so they broadcast along the lane/batch axis.
    """
    return {
        "w1": jnp.asarray(params["w1"], jnp.float32),            # (hid, in)
        "w2": jnp.asarray(params["w2"], jnp.float32),            # (hid, hid)
        "w3": jnp.asarray(params["w3"], jnp.float32),            # (out, hid)
        "b1": jnp.asarray(params["b1"], jnp.float32).reshape(-1, 1),
        "b2": jnp.asarray(params["b2"], jnp.float32).reshape(-1, 1),
        "b3": jnp.asarray(params["b3"], jnp.float32).reshape(-1, 1),
    }


def _cdiv(a, b):
    return -(-a // b)


def _pick_tile_b(B, tile_b):
    """Lane-axis batch tile: multiple of 128, not larger than needed, and with
    an even tile count when possible so v7x's two TensorCores split evenly."""
    tile_b = max(128, (int(tile_b) // 128) * 128)
    b_ceil = _cdiv(B, 128) * 128
    tile_b = min(tile_b, b_ceil)
    num_tiles = _cdiv(B, tile_b)
    if num_tiles > 1 and num_tiles % 2 == 1 and tile_b > 128:
        half = max(128, ((tile_b // 2) // 128) * 128)
        if _cdiv(B, half) % 2 == 0:
            tile_b = half
            num_tiles = _cdiv(B, tile_b)
    return tile_b, num_tiles


def neural_network_forward(x, prepared, *, tile_b=2048, xla_below=0):
    """x: (B, input_size) f32. prepared: output of prepare_params()."""
    B, in_size = x.shape
    hid = prepared["w1"].shape[0]
    out_size = prepared["w3"].shape[0]

    if B <= xla_below:
        # Tiny-batch fast path: for B <~ 64 the pallas_call fixed cost can
        # exceed the fused XLA op for a 9->32->32->9 MLP. Disabled by default
        # (xla_below=0) so the kernel path is always exercised here.
        h1 = jnp.tanh(x @ prepared["w1"].T + prepared["b1"].T)
        h2 = jnp.tanh(h1 @ prepared["w2"].T + prepared["b2"].T)
        return jax.nn.softmax(h2 @ prepared["w3"].T + prepared["b3"].T, axis=1)

    tile_b, num_tiles = _pick_tile_b(B, tile_b)
    b_pad = num_tiles * tile_b

    # Layout plumbing (not compute): present a lane-dense slab to the kernel.
    xt = x.T                                   # (in_size, B)
    if b_pad != B:
        # Zero-padded batch columns produce valid-but-discarded softmax
        # columns; sliced off below.
        xt = jnp.pad(xt, ((0, 0), (0, b_pad - B)))

    const = lambda i: (0, 0)
    in_specs = [
        pl.BlockSpec((in_size, tile_b), lambda i: (0, i)),   # xT   (streamed)
        pl.BlockSpec((hid, in_size), const),                 # w1   (resident)
        pl.BlockSpec((hid, 1), const),                       # b1
        pl.BlockSpec((hid, hid), const),                     # w2
        pl.BlockSpec((hid, 1), const),                       # b2
        pl.BlockSpec((out_size, hid), const),                # w3
        pl.BlockSpec((out_size, 1), const),                  # b3
    ]
    out_spec = pl.BlockSpec((out_size, tile_b), lambda i: (0, i))

    yt = pl.pallas_call(
        _mlp_kernel,
        out_shape=jax.ShapeDtypeStruct((out_size, b_pad), jnp.float32),
        grid=(num_tiles,),
        in_specs=in_specs,
        out_specs=out_spec,
        compiler_params=pltpu.CompilerParams(
            # Batch tiles are independent -> megacore-shardable on v7x.
            dimension_semantics=("parallel",),
            # VMEM footprint is tiny (< 1 MiB streamed buffers at tile_b=2048),
            # well under the v7x 32 MiB scoped default; no override needed.
        ),
    )(
        xt,
        prepared["w1"], prepared["b1"],
        prepared["w2"], prepared["b2"],
        prepared["w3"], prepared["b3"],
    )
    return yt[:, :B].T


def _reference_forward(x, params):
    h1 = jnp.tanh(x @ params["w1"].T + params["b1"])
    h2 = jnp.tanh(h1 @ params["w2"].T + params["b2"])
    logits = h2 @ params["w3"].T + params["b3"]
    return jax.nn.softmax(logits, axis=1)


if __name__ == "__main__":
    # TicTacToe board: 9 input cells, 9 output moves, small hidden width.
    input_size, hidden_size, output_size = 9, 32, 9

    key = jax.random.PRNGKey(0)
    kx, kx2, k1, k2, k3, k4, k5, k6 = jax.random.split(key, 8)

    # Deterministic synthetic parameter init (PyTorch weight convention: (out, in)).
    params = {
        "w1": jax.random.normal(k1, (hidden_size, input_size), jnp.float32) * 0.3,
        "b1": jax.random.normal(k2, (hidden_size,), jnp.float32) * 0.1,
        "w2": jax.random.normal(k3, (hidden_size, hidden_size), jnp.float32) * 0.3,
        "b2": jax.random.normal(k4, (hidden_size,), jnp.float32) * 0.1,
        "w3": jax.random.normal(k5, (output_size, hidden_size), jnp.float32) * 0.3,
        "b3": jax.random.normal(k6, (output_size,), jnp.float32) * 0.1,
    }
    prepared = prepare_params(params)  # one-time, outside the hot path

    # Case 1: small batch (module-consistent shapes), exercises a single
    # 128-lane-padded tile.
    batch = 2
    x = jax.random.normal(kx, (batch, input_size), dtype=jnp.float32)
    out = jax.block_until_ready(neural_network_forward(x, prepared))
    ref = _reference_forward(x, params)
    assert out.shape == (batch, output_size)
    assert jnp.allclose(out, ref, atol=1e-5, rtol=1e-5)
    assert jnp.allclose(jnp.sum(out, axis=1), 1.0, atol=1e-5)

    # Case 2: larger, non-tile-multiple batch exercises the multi-tile batch
    # grid (2 tiles -> even split across v7x's two TensorCores), pipelining,
    # and the resident-weight constant index_maps.
    batch2 = 300
    x2 = jax.random.normal(kx2, (batch2, input_size), dtype=jnp.float32)
    out2 = jax.block_until_ready(neural_network_forward(x2, prepared, tile_b=256))
    ref2 = _reference_forward(x2, params)
    assert out2.shape == (batch2, output_size)
    assert jnp.allclose(out2, ref2, atol=1e-5, rtol=1e-5)
    assert jnp.allclose(jnp.sum(out2, axis=1), 1.0, atol=1e-5)

    print("KERNEL_OK")
</pallas_src>

<mosaic_0001>
module attributes {stable_mosaic.version = 11 : i64} {
  func.func @_mlp_kernel(%arg0: i32, %arg1: memref<9x128xf32, #tpu.memory_space<vmem>>, %arg2: memref<32x9xf32, #tpu.memory_space<vmem>>, %arg3: memref<32x1xf32, #tpu.memory_space<vmem>>, %arg4: memref<32x32xf32, #tpu.memory_space<vmem>>, %arg5: memref<32x1xf32, #tpu.memory_space<vmem>>, %arg6: memref<9x32xf32, #tpu.memory_space<vmem>>, %arg7: memref<9x1xf32, #tpu.memory_space<vmem>>, %arg8: memref<9x128xf32, #tpu.memory_space<vmem>>) attributes {dimension_semantics = [#tpu.dimension_semantics<parallel>], iteration_bounds = array<i64: 1>, scalar_prefetch = 0 : i64, scratch_operands = 0 : i64, tpu.core_type = #tpu.core_type<tc>, window_params = [{transform_indices = @transform_0, window_bounds = array<i64: 9, 128>}, {pipeline_mode = #tpu.pipeline_mode<synchronous>, transform_indices = @transform_1, window_bounds = array<i64: 32, 9>}, {pipeline_mode = #tpu.pipeline_mode<synchronous>, transform_indices = @transform_2, window_bounds = array<i64: 32, 1>}, {pipeline_mode = #tpu.pipeline_mode<synchronous>, transform_indices = @transform_3, window_bounds = array<i64: 32, 32>}, {pipeline_mode = #tpu.pipeline_mode<synchronous>, transform_indices = @transform_4, window_bounds = array<i64: 32, 1>}, {pipeline_mode = #tpu.pipeline_mode<synchronous>, transform_indices = @transform_5, window_bounds = array<i64: 9, 32>}, {pipeline_mode = #tpu.pipeline_mode<synchronous>, transform_indices = @transform_6, window_bounds = array<i64: 9, 1>}, {transform_indices = @transform_7, window_bounds = array<i64: 9, 128>}]} {
    %c0 = arith.constant 0 : index
    %c0_0 = arith.constant 0 : index
    %0 = vector.load %arg1[%c0, %c0_0] : memref<9x128xf32, #tpu.memory_space<vmem>>, vector<9x128xf32>
    %c0_1 = arith.constant 0 : index
    %c0_2 = arith.constant 0 : index
    %1 = vector.load %arg2[%c0_1, %c0_2] : memref<32x9xf32, #tpu.memory_space<vmem>>, vector<32x9xf32>
    %cst = arith.constant dense<0.000000e+00> : vector<32x128xf32>
    %2 = tpu.matmul %1, %0, %cst {dimension_numbers = #tpu.dot_dimension_numbers<[1], [0], [0], [1], [0, 0, 1, 1], [], []>} : vector<32x9xf32>, vector<9x128xf32>, vector<32x128xf32> -> vector<32x128xf32>
    %c0_3 = arith.constant 0 : index
    %c0_4 = arith.constant 0 : index
    %3 = vector.load %arg3[%c0_3, %c0_4] : memref<32x1xf32, #tpu.memory_space<vmem>>, vector<32x1xf32>
    %4 = vector.broadcast %3 : vector<32x1xf32> to vector<32x128xf32>
    %5 = arith.addf %2, %4 : vector<32x128xf32>
    %6 = math.tanh %5 : vector<32x128xf32>
    %c0_5 = arith.constant 0 : index
    %c0_6 = arith.constant 0 : index
    %7 = vector.load %arg4[%c0_5, %c0_6] : memref<32x32xf32, #tpu.memory_space<vmem>>, vector<32x32xf32>
    %cst_7 = arith.constant dense<0.000000e+00> : vector<32x128xf32>
    %8 = tpu.matmul %7, %6, %cst_7 {dimension_numbers = #tpu.dot_dimension_numbers<[1], [0], [0], [1], [0, 0, 1, 1], [], []>} : vector<32x32xf32>, vector<32x128xf32>, vector<32x128xf32> -> vector<32x128xf32>
    %c0_8 = arith.constant 0 : index
    %c0_9 = arith.constant 0 : index
    %9 = vector.load %arg5[%c0_8, %c0_9] : memref<32x1xf32, #tpu.memory_space<vmem>>, vector<32x1xf32>
    %10 = vector.broadcast %9 : vector<32x1xf32> to vector<32x128xf32>
    %11 = arith.addf %8, %10 : vector<32x128xf32>
    %12 = math.tanh %11 : vector<32x128xf32>
    %c0_10 = arith.constant 0 : index
    %c0_11 = arith.constant 0 : index
    %13 = vector.load %arg6[%c0_10, %c0_11] : memref<9x32xf32, #tpu.memory_space<vmem>>, vector<9x32xf32>
    %cst_12 = arith.constant dense<0.000000e+00> : vector<9x128xf32>
    %14 = tpu.matmul %13, %12, %cst_12 {dimension_numbers = #tpu.dot_dimension_numbers<[1], [0], [0], [1], [0, 0, 1, 1], [], []>} : vector<9x32xf32>, vector<32x128xf32>, vector<9x128xf32> -> vector<9x128xf32>
    %c0_13 = arith.constant 0 : index
    %c0_14 = arith.constant 0 : index
    %15 = vector.load %arg7[%c0_13, %c0_14] : memref<9x1xf32, #tpu.memory_space<vmem>>, vector<9x1xf32>
    %16 = vector.broadcast %15 : vector<9x1xf32> to vector<9x128xf32>
    %17 = arith.addf %14, %16 : vector<9x128xf32>
    %cst_15 = arith.constant dense<0xFF800000> : vector<128xf32>
    %18 = vector.multi_reduction <maximumf>, %17, %cst_15 [0] : vector<9x128xf32> to vector<128xf32>
    %19 = vector.shape_cast %18 : vector<128xf32> to vector<1x128xf32>
    %20 = vector.broadcast %19 : vector<1x128xf32> to vector<9x128xf32>
    %21 = arith.subf %17, %20 : vector<9x128xf32>
    %22 = math.exp %21 : vector<9x128xf32>
    %cst_16 = arith.constant dense<0.000000e+00> : vector<128xf32>
    %23 = vector.multi_reduction <add>, %22, %cst_16 [0] : vector<9x128xf32> to vector<128xf32>
    %24 = vector.shape_cast %23 : vector<128xf32> to vector<1x128xf32>
    %25 = tpu.reciprocal %24 : vector<1x128xf32> -> vector<1x128xf32>
    %26 = vector.broadcast %25 : vector<1x128xf32> to vector<9x128xf32>
    %27 = arith.mulf %22, %26 : vector<9x128xf32>
    %c0_17 = arith.constant 0 : index
    %c0_18 = arith.constant 0 : index
    %28 = vector.load %arg8[%c0_17, %c0_18] : memref<9x128xf32, #tpu.memory_space<vmem>>, vector<9x128xf32>
    tpu.vector_store %arg8[%c0_17, %c0_18], %27 {strides = array<i32>} : memref<9x128xf32, #tpu.memory_space<vmem>>, vector<9x128xf32>,
    return
  }
  func.func @transform_0(%arg0: i32) -> (i32, i32) {
    %c0_i32 = arith.constant 0 : i32
    %c0_i32_0 = arith.constant 0 : i32
    return %c0_i32, %arg0 : i32, i32
  }
  func.func @transform_1(%arg0: i32) -> (i32, i32) {
    %c0_i32 = arith.constant 0 : i32
    %c0_i32_0 = arith.constant 0 : i32
    %c0_i32_1 = arith.constant 0 : i32
    return %c0_i32, %c0_i32_0 : i32, i32
  }
  func.func @transform_2(%arg0: i32) -> (i32, i32) {
    %c0_i32 = arith.constant 0 : i32
    %c0_i32_0 = arith.constant 0 : i32
    %c0_i32_1 = arith.constant 0 : i32
    return %c0_i32, %c0_i32_0 : i32, i32
  }
  func.func @transform_3(%arg0: i32) -> (i32, i32) {
    %c0_i32 = arith.constant 0 : i32
    %c0_i32_0 = arith.constant 0 : i32
    %c0_i32_1 = arith.constant 0 : i32
    return %c0_i32, %c0_i32_0 : i32, i32
  }
  func.func @transform_4(%arg0: i32) -> (i32, i32) {
    %c0_i32 = arith.constant 0 : i32
    %c0_i32_0 = arith.constant 0 : i32
    %c0_i32_1 = arith.constant 0 : i32
    return %c0_i32, %c0_i32_0 : i32, i32
  }
  func.func @transform_5(%arg0: i32) -> (i32, i32) {
    %c0_i32 = arith.constant 0 : i32
    %c0_i32_0 = arith.constant 0 : i32
    %c0_i32_1 = arith.constant 0 : i32
    return %c0_i32, %c0_i32_0 : i32, i32
  }
  func.func @transform_6(%arg0: i32) -> (i32, i32) {
    %c0_i32 = arith.constant 0 : i32
    %c0_i32_0 = arith.constant 0 : i32
    %c0_i32_1 = arith.constant 0 : i32
    return %c0_i32, %c0_i32_0 : i32, i32
  }
  func.func @transform_7(%arg0: i32) -> (i32, i32) {
    %c0_i32 = arith.constant 0 : i32
    %c0_i32_0 = arith.constant 0 : i32
    return %c0_i32, %arg0 : i32, i32
  }
}

</mosaic_0001>

<bundles_post_ra>
// kernel: tpu_custom_call.1
= control target key start
LH: loop header
LB: loop body
LE: loop exit
PB: predicated region body
PF: predicated region fallthrough
CT: control target
= control target key end

     0   :  { %vm70_vm0 = vcmask 1040384   ;;  %vm57_vm1 = vcmask 72704   ;;  %v547_v4 = vmov 0   ;;  %s674_s0 = inlined_call_operand.vmem [shape: f32[9,128], index: 0, kind: input, shape index: {}]   ;;  %s675_s1 = inlined_call_operand.vmem [shape: f32[32,9], index: 1, kind: input, shape index: {}]   ;;  %s676_s2 = inlined_call_operand.vmem [shape: f32[32,1], index: 2, kind: input, shape index: {}]   ;;  %s677_s3 = inlined_call_operand.vmem [shape: f32[32,32], index: 3, kind: input, shape index: {}]   ;;  %s678_s4 = inlined_call_operand.vmem [shape: f32[32,1], index: 4, kind: input, shape index: {}]   ;;  %s679_s5 = inlined_call_operand.vmem [shape: f32[9,32], index: 5, kind: input, shape index: {}]   ;;  %s680_s6 = inlined_call_operand.vmem [shape: f32[9,1], index: 6, kind: input, shape index: {}]   ;;  %s681_s7 = inlined_call_operand.hbm [shape: f32[9,128], index: 7, kind: output, shape index: {}]  }
   0x1   :  { %v28_v0 = vld [vmem:[%s674_s0 + $0x8] sm:$0x1]  ;;  %v27_v1 = vld [vmem:[%s674_s0] sm:$0xff]  ;;  %501 = vset.pattern.permute.xlu0 %v547_v4  ;;  %v36_v5 = vld [vmem:[%s676_s2 + $0x18] sm:$0xff]  ;;  %502 = vset.pattern.permute.xlu1 %v547_v4 }
   0x2   :  { %v29_v2 = vld [vmem:[%s675_s1] sm:$0xff]  ;;  %462 = vmatprep.subr.msk.mxu0 %vm70_vm0, %v28_v0  ;;  %v30_v3 = vld [vmem:[%s675_s1 + $0x8] sm:$0xff]  ;;  %v31_v7 = vld [vmem:[%s675_s1 + $0x10] sm:$0xff]  ;;  %54 = vperm.xlu0 %501, %v36_v5  }
   0x3   :  { %466 = vmatprep.mubr.msk.f32.mxu0 %vm57_vm1, %v29_v2  ;;  %463 = vmatpush3.msk.msra.mxu0 %vm70_vm0, %v28_v0  ;;  %v34_v6 = vld [vmem:[%s676_s2 + $0x8] sm:$0xff]  ;;  %v35_v8 = vld [vmem:[%s676_s2 + $0x10] sm:$0xff] }
   0x4   :  { %464 = vmatprep.subr.mxu0 %v27_v1  ;;  %44 = vperm.xlu1 %502, %v34_v6  }
   0x5   :  { %465 = vmatpush3.msra.mxu0 %v27_v1 }
   0x6   :  { %467 = vmatmul.mubr.msk.f32.vlgmr.msra.gmra.mxu0 %vm57_vm1, %v30_v3 }
   0x7   :  { %12 = vsyncpa [#allocation3], 0  ;;  %469 = vmatprep.mubr.msk.f32.mxu0 %vm57_vm1, %v31_v7  ;;  %v32_v9 = vld [vmem:[%s675_s1 + $0x18] sm:$0xff]  ;;  %v33_v10 = vld [vmem:[%s676_s2] sm:$0xff]  ;;  %49 = vperm.xlu0 %501, %v35_v8   ;;  %vm191_vm2 = vcmask 261120  }
   0x8   :  { %v170_v11 = vld [vmem:[%s678_s4 + $0x18] sm:$0xff]  ;;  %39 = vperm.xlu1 %502, %v33_v10   ;;  %v169_v12 = vld [vmem:[%s678_s4 + $0x10] sm:$0xff]  ;;  %v168_v13 = vld [vmem:[%s678_s4 + $0x8] sm:$0xff] }
   0x9   :  { %v167_v14 = vld [vmem:[%s678_s4] sm:$0xff]  ;;  %v296_v15 = vld [vmem:[%s680_s6 + $0x8] sm:$0x1]  ;;  %v165_v35 = vld [vmem:[%s677_s3 + $0x10] sm:$0xff] }
   0xa   :  { %470 = vmatmul.mubr.msk.f32.gmra.mxu0 %vm57_vm1, %v32_v9  ;;  %v295_v16 = vld [vmem:[%s680_s6] sm:$0xff]  ;;  %v164_v34 = vld [vmem:[%s677_s3 + $0x8] sm:$0xff]  ;;  %v166_v36 = vld [vmem:[%s677_s3 + $0x18] sm:$0xff] }
   0xb   :  { %188 = vperm.xlu0 %501, %v170_v11   ;;  %v163_v17 = vld [vmem:[%s677_s3] sm:$0xff]  ;;  %v294_v54 = vld [vmem:[%s679_s5 + $0x8] sm:$0x1] }
   0xc   :  { %183 = vperm.xlu1 %502, %v169_v12   ;;  %480 = vmatprep.mubr.msk.f32.mxu1 %vm191_vm2, %v163_v17  ;;  %v293_v37 = vld [vmem:[%s679_s5] sm:$0xff]  ;;  %s548_s5 = smov [#allocation2]  }
   0xd   :  { %494 = vmatprep.mubr.msk.f32.mxu0 %vm191_vm2, %v293_v37  ;;  %s420_s15 = sshll.u32 %s548_s5, 4  ;;  %s421_s15 = int_to_ptr.vmem [resolvable:$true] %s420_s15 }
   0xe   :  { %s525_s16 = scalar_lea.vmem %s421_s15, 256  ;;  %p530_p1 = scmp.lt.s32.totalorder %s421_s15, %s421_s15 }
   0xf   :  { %178 = vperm.xlu0 %501, %v168_v13   ;;  %p526_p0 = scmp.ne.s32.totalorder %s421_s15, %s525_s16  ;;  %p531_p2 = scmp.lt.s32.totalorder %s525_s16, %s525_s16 }
  0x10   :  { %173 = vperm.xlu1 %502, %v167_v14  }
  0x11   :  { %p532_p3 = por %p531_p2, %p530_p1 }
  0x13   :  { %304 = vperm.xlu0 %501, %v296_v15   ;;  %p533_p4 = pnand %p532_p3, %p526_p0 }
  0x14   :  { %299 = vperm.xlu1 %502, %v295_v16  }
  0x7d   :  { %v55_v18 = vpop.permute.xlu0 %54 }
  0x7f   :  { %v45_v20 = vpop.permute.xlu1 %44 }
  0x82   :  { %v50_v24 = vpop.permute.xlu0 %49 }
  0x83   :  { %v40_v28 = vpop.permute.xlu1 %39 }
  0x86   :  { %v189_v38 = vpop.permute.xlu0 %188 }
  0x87   :  { %v184_v40 = vpop.permute.xlu1 %183 }
  0x8a   :  { %v179_v44 = vpop.permute.xlu0 %178 }
  0x8b   :  { %v174_v48 = vpop.permute.xlu1 %173 }
  0x8e   :  { %v305_v55 = vpop.permute.xlu0 %304 }
  0x8f   :  { %v300_v58 = vpop.permute.xlu1 %299 }
  0xc6   :  { %v468_v19 = vpop.f32.mrf.mxu0 }
  0xc7   :  { %v146_v26 = vadd.f32 %v468_v19, %v45_v20 }
  0xc8   :  { %v140_v21 = vpop.f32.mrf.mxu0 }
  0xc9   :  { %v141_v29 = vadd.f32 %v140_v21, %v40_v28 }
  0xca   :  { %v471_v22 = vpop.f32.mrf.mxu0 }
  0xcb   :  { %v156_v23 = vadd.f32 %v471_v22, %v55_v18 }
  0xcc   :  { %v150_v25 = vpop.f32.mrf.mxu0 }
  0xcd   :  { %503 = vtanh.f32 %v156_v23  ;;  %v151_v27 = vadd.f32 %v150_v25, %v50_v24 }
  0xcf   :  { %505 = vtanh.f32 %v151_v27 }
  0xd0   :  { %507 = vtanh.f32 %v146_v26 }
  0xd1   :  { %509 = vtanh.f32 %v141_v29 }
  0xda   :  { %v504_v30 = vpop.eup %503 }
  0xdb   :  { %472 = vmatprep.subr.mxu1 %v504_v30 }
  0xdc   :  { %v506_v31 = vpop.eup %505  ;;  %473 = vmatpush3.msra.mxu1 %v504_v30 }
  0xdd   :  { %474 = vmatprep.subr.mxu1 %v506_v31  ;;  %v508_v32 = vpop.eup %507 }
  0xde   :  { %475 = vmatpush3.msra.mxu1 %v506_v31  ;;  %v510_v33 = vpop.eup %509 }
  0xdf   :  { %476 = vmatprep.subr.mxu1 %v508_v32 }
  0xe0   :  { %477 = vmatpush3.msra.mxu1 %v508_v32 }
  0xe1   :  { %478 = vmatprep.subr.mxu1 %v510_v33 }
  0xe2   :  { %479 = vmatpush3.msra.mxu1 %v510_v33 }
  0xe3   :  { %481 = vmatmul.mubr.msk.f32.vlgmr.msra.gmra.mxu1 %vm191_vm2, %v164_v34 }
  0xe4   :  { %483 = vmatprep.mubr.msk.f32.mxu1 %vm191_vm2, %v165_v35 }
  0xe7   :  { %484 = vmatmul.mubr.msk.f32.gmra.mxu1 %vm191_vm2, %v166_v36 }
 0x1a3   :  { %v482_v39 = vpop.f32.mrf.mxu1 }
 0x1a4   :  { %v276_v46 = vadd.f32 %v482_v39, %v179_v44 }
 0x1a5   :  { %v270_v41 = vpop.f32.mrf.mxu1 }
 0x1a6   :  { %v271_v49 = vadd.f32 %v270_v41, %v174_v48 }
 0x1a7   :  { %v485_v42 = vpop.f32.mrf.mxu1 }
 0x1a8   :  { %v286_v43 = vadd.f32 %v485_v42, %v189_v38 }
 0x1a9   :  { %v280_v45 = vpop.f32.mrf.mxu1 }
 0x1aa   :  { %511 = vtanh.f32 %v286_v43  ;;  %v281_v47 = vadd.f32 %v280_v45, %v184_v40 }
 0x1ac   :  { %513 = vtanh.f32 %v281_v47 }
 0x1ad   :  { %515 = vtanh.f32 %v276_v46 }
 0x1ae   :  { %517 = vtanh.f32 %v271_v49 }
 0x1b7   :  { %v512_v50 = vpop.eup %511 }
 0x1b8   :  { %486 = vmatprep.subr.mxu0 %v512_v50 }
 0x1b9   :  { %v514_v51 = vpop.eup %513  ;;  %487 = vmatpush3.msra.mxu0 %v512_v50 }
 0x1ba   :  { %488 = vmatprep.subr.mxu0 %v514_v51  ;;  %v516_v52 = vpop.eup %515 }
 0x1bb   :  { %489 = vmatpush3.msra.mxu0 %v514_v51  ;;  %v518_v53 = vpop.eup %517 }
 0x1bc   :  { %490 = vmatprep.subr.mxu0 %v516_v52 }
 0x1bd   :  { %491 = vmatpush3.msra.mxu0 %v516_v52 }
 0x1be   :  { %492 = vmatprep.subr.mxu0 %v518_v53 }
 0x1bf   :  { %493 = vmatpush3.msra.mxu0 %v518_v53 }
 0x1c0   :  { %495 = vmatmul.mubr.msk.f32.vlgmr.msra.gmra.mxu0 %vm191_vm2, %v294_v54 }
 0x280   :  { %v496_v56 = vpop.f32.mrf.mxu0 }
 0x281   :  { %v385_v57 = vadd.f32 %v496_v56, %v305_v55 }
 0x282   :  { %v379_v59 = vpop.f32.mrf.mxu0 }
 0x283   :  { %v388_v60 = vsel %vm70_vm0, %v385_v57, -inf  ;;  %v380_v61 = vadd.f32 %v379_v59, %v300_v58 }
 0x285   :  { %v389_v62 = vmax.f32 %v380_v61, %v388_v60 }
 0x287   :  { %v390_v63 = vrot.slane %v389_v62, 4 }
 0x289   :  { %v391_v0 = vmax.f32 %v389_v62, %v390_v63 }
 0x28b   :  { %v392_v1 = vrot.slane %v391_v0, 2 }
 0x28d   :  { %v393_v2 = vmax.f32 %v391_v0, %v392_v1 }
 0x28f   :  { %v394_v3 = vrot.slane %v393_v2, 1 }
 0x291   :  { %v395_v4 = vmax.f32 %v393_v2, %v394_v3 }
 0x293   :  { %v396_v5 = vsub.f32 %v380_v61, %v395_v4  ;;  %v397_v6 = vsub.f32 %v385_v57, %v395_v4 }
 0x295   :  { %v398_v7 = vmul.f32 1.442695, %v396_v5  ;;  %v400_v8 = vmul.f32 1.442695, %v397_v6 }
 0x297   :  { %519 = vpow2.f32 %v398_v7 }
 0x298   :  { %521 = vpow2.f32 %v400_v8 }
 0x2a4   :  { %v520_v9 = vpop.eup %519 }
 0x2a5   :  { %v522_v10 = vpop.eup %521 }
 0x2a6   :  { %v402_v11 = vsel %vm70_vm0, %v522_v10, 0.0 }
 0x2a7   :  { %v403_v12 = vadd.f32 %v520_v9, %v402_v11 }
 0x2a9   :  { %v404_v13 = vrot.slane %v403_v12, 4 }
 0x2ab   :  { %v405_v14 = vadd.f32 %v404_v13, %v403_v12 }
 0x2ad   :  { %v406_v15 = vrot.slane %v405_v14, 2 }
 0x2af   :  { %v407_v16 = vadd.f32 %v406_v15, %v405_v14 }
 0x2b1   :  { %v408_v17 = vrot.slane %v407_v16, 1 }
 0x2b3   :  { %v409_v18 = vadd.f32 %v408_v17, %v407_v16 }
 0x2b5   :  { %523 = vrcp.f32 %v409_v18 }
 0x2c2   :  { %v524_v19 = vpop.eup %523 }
 0x2c3   :  { %v411_v20 = vmul.f32 %v524_v19, %v520_v9  ;;  %v412_v21 = vmul.f32 %v524_v19, %v522_v10 }
 0x2c5   :  { %413 = vst [vmem:[#allocation2] sm:$0xff] %v411_v20  ;;  %414 = vst [vmem:[#allocation2 + $0x8] sm:$0x1] %v412_v21 }
 0x2c6   :  { %536 = shalt.err (!%p533_p4)
}
 0x2c7   :  { %s549_s17 = smov 128   ;;  %s550_s18 = smov 8  }
 0x2c8   :  { %426 = dma.vmem_to_hbm [thread:$0]  %s421_s15, 256, %s681_s7, [#allocation3], %s549_s17, %s549_s17, %s550_s18  }
 0x2c9   :  { %545 = dma.done.wait [#allocation3], 256  }
 0x2ca   :  { %546 = vsyncadd [#allocation3], 4294967040 }
 0x2cb   :  { %430 = vsyncpa [#allocation3], 1 }

</bundles_post_ra>
